<compile_context>
chip_gen: v7x
topology: tpu7x:2x2x1
jax: 0.10.0
libtpu: 0.0.40
codegen_flags: <defaults>
</compile_context>

<pallas_src>
import functools
import math

import jax
import jax.numpy as jnp
from jax import lax
from jax.experimental import pallas as pl
from jax.experimental.pallas import tpu as pltpu
from jax.scipy.special import logsumexp

_LANE = 128
_NEG_BIG = -1e30  # finite stand-in for -inf (avoids inf - inf -> NaN)


def _round_up(x, m):
    return (x + m - 1) // m * m


# --------------------------------------------------------------------------- #
# Kernel
# --------------------------------------------------------------------------- #
def _infonce_kernel(inv_temp_ref, n_valid_ref, ref_ref, neg_ref,
                    lse_out_ref, max_out_ref,
                    r_scaled_ref, m_ref, l_ref,
                    *, apply_col_mask, tn):
    """One (row-tile i, column-tile j) step of the streaming InfoNCE lse."""
    j = pl.program_id(1)
    n_col_steps = pl.num_programs(1)
    n_chunks = tn // _LANE

    @pl.when(j == 0)
    def _init():
        # Fold the inverse temperature into the (tm, d) ref tile once
        # (O(tm*d)) instead of scaling the (tm, tn) logits every step; keep
        # the MXU operand in the input dtype (bf16 stays bf16).
        inv_t = inv_temp_ref[0]
        rf = ref_ref[...].astype(jnp.float32) * inv_t
        r_scaled_ref[...] = rf.astype(r_scaled_ref.dtype)
        m_ref[...] = jnp.full(m_ref.shape, _NEG_BIG, m_ref.dtype)
        l_ref[...] = jnp.zeros(l_ref.shape, l_ref.dtype)

    # (tm, tn) logits tile on the MXU, contracting the last dims of both
    # operands (no explicit transpose of the streamed neg tile).
    logits = lax.dot_general(
        r_scaled_ref[...], neg_ref[...],
        dimension_numbers=(((1,), (1,)), ((), ())),
        preferred_element_type=jnp.float32)

    def _lse_update(lg):
        # Lane-vectorized online logsumexp: 128 independent (max, sum) streams
        # per row -> per-step update is pure VPU/EUP work, no cross-lane XLU.
        m_prev = m_ref[...]                                     # (tm, 128)
        m_new = m_prev
        for c in range(n_chunks):
            m_new = jnp.maximum(m_new, lg[:, c * _LANE:(c + 1) * _LANE])
        alpha = jnp.exp(m_prev - m_new)
        l_new = alpha * l_ref[...]
        for c in range(n_chunks):
            l_new = l_new + jnp.exp(lg[:, c * _LANE:(c + 1) * _LANE] - m_new)
        m_ref[...] = m_new
        l_ref[...] = l_new

    if apply_col_mask:
        # Only the LAST column tile contains padded columns; gate the mask so
        # the other nc-1 steps skip the iota/compare/select entirely.
        is_last = j == n_col_steps - 1

        @pl.when(jnp.logical_not(is_last))
        def _full_tile():
            _lse_update(logits)

        @pl.when(is_last)
        def _masked_tile():
            col = j * tn + lax.broadcasted_iota(jnp.int32, (1, tn), 1)
            _lse_update(jnp.where(col < n_valid_ref[0], logits, _NEG_BIG))
    else:
        _lse_update(logits)

    @pl.when(j == n_col_steps - 1)
    def _finalize():
        # Single 128 -> 1 cross-lane combine per row tile.
        m_vec = m_ref[...]                                      # (tm, 128)
        l_vec = l_ref[...]
        m_row = jnp.max(m_vec, axis=1, keepdims=True)           # (tm, 1)
        l_row = jnp.sum(l_vec * jnp.exp(m_vec - m_row), axis=1, keepdims=True)
        lse_out_ref[...] = m_row + jnp.log(l_row)
        max_out_ref[...] = m_row


# --------------------------------------------------------------------------- #
# Tile selection / VMEM budgeting
# --------------------------------------------------------------------------- #
def _vmem_budget_bytes():
    """VMEM budget derived from the local chip (v5e/v6e: 128 MiB, v7x: 64)."""
    cap = 64 * 1024 * 1024  # conservative fallback also valid on v7x
    try:
        cap = int(pltpu.get_tpu_info().vmem_capacity_bytes)
    except Exception:
        pass
    # Leave headroom for compiler-internal scratch / semaphores.
    return min((cap * 3) // 4, 96 * 1024 * 1024)


def _select_tiles(n_rows_total, n_cols_total, d, itemsize, tm_max, tn_max,
                  budget):
    """Pick lane-aligned (tm, tn) as large as the VMEM budget allows."""
    tm = min(tm_max, _round_up(n_rows_total, _LANE))
    tn = min(tn_max, _round_up(n_cols_total, _LANE))

    def need(tm_, tn_):
        bufs = (2 * tm_ * d + 2 * tn_ * d + tm_ * d) * itemsize   # ref x2, neg x2, r_scaled
        bufs += 2 * tm_ * _LANE * 4                               # m / l state
        bufs += 4 * tm_ * 4                                       # lse/max outputs (x2 buffers)
        tmp = 3 * tm_ * tn_ * 4                                   # f32 logits / exp temporaries
        return bufs + tmp

    # Shrink tn first (keeps arithmetic intensity on the streamed neg high).
    while need(tm, tn) > budget and (tm > _LANE or tn > _LANE):
        if tn >= tm and tn > _LANE:
            tn = max(_LANE, _round_up(tn // 2, _LANE))
        else:
            tm = max(_LANE, _round_up(tm // 2, _LANE))
    return tm, tn


# --------------------------------------------------------------------------- #
# Pallas wrapper
# --------------------------------------------------------------------------- #
def infonce_rows_pallas(ref_z, neg_z, inverse_temperature, *,
                        tm_max=1024, tn_max=2048):
    """Row-wise logsumexp and row-wise max of (ref * inv_t) @ neg^T.

    Returns (lse, row_max), both float32 of shape (n,). The (n, n) logits
    matrix is never materialized in HBM.
    """
    n, d = ref_z.shape
    n_neg, d_neg = neg_z.shape
    assert d_neg == d

    itemsize = jnp.dtype(ref_z.dtype).itemsize
    budget = _vmem_budget_bytes()
    tm, tn = _select_tiles(n, n_neg, d, itemsize, tm_max, tn_max, budget)
    # TODO(synk): on dual-TensorCore chips (v7x) cap tm so the "parallel" row
    # axis has >= 2 blocks and both cores are fed.

    n_rows = _round_up(n, tm)
    n_cols = _round_up(n_neg, tn)
    nr, nc = n_rows // tm, n_cols // tn

    def _pad_rows(x, total):
        if total == x.shape[0]:
            return x
        return jnp.pad(x, ((0, total - x.shape[0]), (0, 0)))

    ref_p = _pad_rows(ref_z, n_rows)
    neg_p = _pad_rows(neg_z, n_cols)

    inv_t = jnp.asarray(inverse_temperature, jnp.float32).reshape((1,))
    n_valid = jnp.asarray([n_neg], jnp.int32)
    apply_col_mask = (n_cols != n_neg)

    kernel = functools.partial(_infonce_kernel,
                               apply_col_mask=apply_col_mask, tn=tn)

    cost = pl.CostEstimate(
        flops=2 * n_rows * n_cols * d,
        transcendentals=n_rows * n_cols + nr * nc * tm * _LANE,
        # neg is re-streamed once per row tile (nr times); ref once per tile.
        bytes_accessed=(n_rows * d + nr * n_cols * d) * itemsize + 2 * n_rows * 4)

    grid_spec = pltpu.PrefetchScalarGridSpec(
        num_scalar_prefetch=0,
        grid=(nr, nc),
        in_specs=[
            pl.BlockSpec(memory_space=pltpu.MemorySpace.SMEM),   # inverse temperature (1,)
            pl.BlockSpec(memory_space=pltpu.MemorySpace.SMEM),   # valid column count (1,)
            pl.BlockSpec((tm, d), lambda i, j: (i, 0)),          # ref row tile (resident over j)
            pl.BlockSpec((tn, d), lambda i, j: (j, 0)),          # neg column tile (streamed)
        ],
        out_specs=[
            pl.BlockSpec((tm, 1), lambda i, j: (i, 0)),          # per-row logsumexp
            pl.BlockSpec((tm, 1), lambda i, j: (i, 0)),          # per-row max
        ],
        scratch_shapes=[
            pltpu.VMEM((tm, d), ref_z.dtype),        # inv_t-scaled ref tile (MXU operand)
            pltpu.VMEM((tm, _LANE), jnp.float32),    # lane-vectorized running max
            pltpu.VMEM((tm, _LANE), jnp.float32),    # lane-vectorized running sum
        ],
    )

    lse_rows, max_rows = pl.pallas_call(
        kernel,
        out_shape=(jax.ShapeDtypeStruct((n_rows, 1), jnp.float32),
                   jax.ShapeDtypeStruct((n_rows, 1), jnp.float32)),
        grid_spec=grid_spec,
        compiler_params=pltpu.CompilerParams(
            dimension_semantics=("parallel", "arbitrary"),
            vmem_limit_bytes=int(budget)),
        cost_estimate=cost,
    )(inv_t, n_valid, ref_p, neg_p)

    return lse_rows[:n, 0], max_rows[:n, 0]


# --------------------------------------------------------------------------- #
# Loss functions (module semantics)
# --------------------------------------------------------------------------- #
def infonce_pallas(ref_z, pos_z, neg_z, inverse_temperature, **tile_kw):
    """`infonce(dot_similarity(...) * inv_t)` -> (loss, align, uniform)."""
    inv_t = jnp.asarray(inverse_temperature, jnp.float32)
    # O(n*d) positive-pair path stays in XLA (trivially fused).
    pos_dist = jnp.einsum('nd,nd->n', ref_z.astype(jnp.float32),
                          pos_z.astype(jnp.float32)) * inv_t
    lse, _ = infonce_rows_pallas(ref_z, neg_z, inv_t, **tile_kw)
    align = -jnp.mean(pos_dist)
    uniform = jnp.mean(lse)
    return align + uniform, align, uniform


def info_nce_pallas(ref_z, pos_z, neg_z, tau=1.0, **tile_kw):
    """Max-shifted `info_nce` (as used by contrast_recon_loss)."""
    inv_t = jnp.float32(1.0) / jnp.asarray(tau, jnp.float32)
    pos_dist = jnp.einsum('nd,nd->n', ref_z.astype(jnp.float32),
                          pos_z.astype(jnp.float32)) * inv_t
    lse, row_max = infonce_rows_pallas(ref_z, neg_z, inv_t, **tile_kw)
    c_mean = jnp.mean(row_max)
    pos_loss = -jnp.mean(pos_dist) + c_mean
    neg_loss = jnp.mean(lse) - c_mean
    return {'loss': pos_loss + neg_loss, 'pos_loss': pos_loss,
            'neg_loss': neg_loss}


def contrast_recon_loss_pallas(ref, pos, neg, fix_temp=True, **tile_kw):
    _temp = 1.0 if fix_temp else ref['temp']
    nce = info_nce_pallas(ref['z'], pos['z'], neg['z'], _temp, **tile_kw)
    mean_recon = (ref['recon_loss'] + pos['recon_loss'] + neg['recon_loss']) / 3
    loss = mean_recon + nce['loss']
    return {'loss': loss, 'recon_loss': mean_recon,
            'pos_loss': nce['pos_loss'], 'neg_loss': nce['neg_loss'],
            'contrast_loss': nce['loss']}


class LossFn:
    """JAX/Pallas equivalent of the PyTorch `loss_fn` module (forward pass)."""

    def __init__(self, nce_type='learnable_cosine', temperature=1.0,
                 min_temperature=None):
        self.nce_type = nce_type
        if nce_type == 'learnable_cosine':
            # Deterministic init, exactly nn.Parameter(log(1/temperature)).
            self.log_inverse_temperature = jnp.float32(
                math.log(1.0 / float(temperature)))
            self.max_inverse_temperature = (math.inf if min_temperature is None
                                            else 1.0 / float(min_temperature))
        elif nce_type == 'fixed_cosine':
            self.temperature = float(temperature)
        else:
            raise ValueError(f"unknown nce_type: {nce_type}")

    def _inverse_temperature(self):
        if self.nce_type == 'learnable_cosine':
            inv = jnp.exp(self.log_inverse_temperature)
            return jnp.minimum(inv, self.max_inverse_temperature)
        return jnp.float32(1.0 / self.temperature)

    def __call__(self, ref, pos, neg):
        if 'recon_loss' in ref:
            return contrast_recon_loss_pallas(ref, pos, neg)
        loss, pos_loss, neg_loss = infonce_pallas(
            ref['z'], pos['z'], neg['z'], self._inverse_temperature())
        return {'loss': loss, 'pos_loss': pos_loss, 'neg_loss': neg_loss}


# --------------------------------------------------------------------------- #
# Pure-JAX references (for validation)
# --------------------------------------------------------------------------- #
def _reference_infonce(ref_z, pos_z, neg_z, inv_t):
    ref_f, pos_f, neg_f = (x.astype(jnp.float32) for x in (ref_z, pos_z, neg_z))
    pos_dist = jnp.einsum('ni,ni->n', ref_f, pos_f) * inv_t
    neg_dist = jnp.einsum('ni,mi->nm', ref_f, neg_f) * inv_t
    align = -jnp.mean(pos_dist)
    uniform = jnp.mean(logsumexp(neg_dist, axis=1))
    return align + uniform, align, uniform


def _reference_info_nce(ref_z, pos_z, neg_z, tau=1.0):
    ref_f, pos_f, neg_f = (x.astype(jnp.float32) for x in (ref_z, pos_z, neg_z))
    pos_dist = jnp.einsum('nd,nd->n', ref_f, pos_f) / tau
    neg_dist = jnp.einsum('nd,md->nm', ref_f, neg_f) / tau
    c = jnp.max(neg_dist, axis=1, keepdims=True)
    pos_dist = pos_dist - c[:, 0]
    neg_dist = neg_dist - c
    pos_loss = -jnp.mean(pos_dist)
    neg_loss = jnp.mean(logsumexp(neg_dist, axis=1))
    return {'loss': pos_loss + neg_loss, 'pos_loss': pos_loss,
            'neg_loss': neg_loss}


# --------------------------------------------------------------------------- #
# Self-test
# --------------------------------------------------------------------------- #
if __name__ == "__main__":
    def _normed(k, n, d, dtype=jnp.float32):
        z = jax.random.normal(k, (n, d), dtype=jnp.float32)
        z = z / jnp.linalg.norm(z, axis=-1, keepdims=True)
        return z.astype(dtype)

    key = jax.random.PRNGKey(0)
    ks = jax.random.split(key, 9)

    # --- test 1: tiny batch through the module (learnable temperature);
    #     n < 128 exercises the fully-masked lane-slot path -------------------
    n, d = 8, 32
    ref = {'z': _normed(ks[0], n, d)}
    pos = {'z': _normed(ks[1], n, d)}
    neg = {'z': _normed(ks[2], n, d)}
    loss_mod = LossFn(nce_type='learnable_cosine', temperature=1.0)
    out = loss_mod(ref, pos, neg)
    jax.block_until_ready(out['loss'])
    inv_t = loss_mod._inverse_temperature()
    e_loss, e_pos, e_neg = _reference_infonce(ref['z'], pos['z'], neg['z'], inv_t)
    assert jnp.allclose(out['loss'], e_loss, atol=1e-5), (out['loss'], e_loss)
    assert jnp.allclose(out['pos_loss'], e_pos, atol=1e-5)
    assert jnp.allclose(out['neg_loss'], e_neg, atol=1e-5)

    # --- test 2: multi-tile grid (small forced tiles), online lse across
    #     column steps, padded-column masking, non-unit temperature ----------
    n2, d2 = 200, 32
    ref2 = _normed(ks[3], n2, d2)
    pos2 = _normed(ks[4], n2, d2)
    neg2 = _normed(ks[5], n2, d2)
    inv_t2 = jnp.float32(1.0 / 0.5)
    l2, p2, u2 = infonce_pallas(ref2, pos2, neg2, inv_t2,
                                tm_max=128, tn_max=128)
    jax.block_until_ready(l2)
    e2 = _reference_infonce(ref2, pos2, neg2, inv_t2)
    assert jnp.allclose(l2, e2[0], atol=1e-4), (l2, e2[0])
    assert jnp.allclose(p2, e2[1], atol=1e-4)
    assert jnp.allclose(u2, e2[2], atol=1e-4)

    # --- test 3: bf16 inputs, fixed temperature, default (large) tiles ------
    n3, d3 = 256, 64
    ref3 = _normed(ks[6], n3, d3, jnp.bfloat16)
    pos3 = _normed(ks[7], n3, d3, jnp.bfloat16)
    neg3 = _normed(ks[8], n3, d3, jnp.bfloat16)
    mod3 = LossFn(nce_type='fixed_cosine', temperature=1.0)
    out3 = mod3({'z': ref3}, {'z': pos3}, {'z': neg3})
    jax.block_until_ready(out3['loss'])
    e3 = _reference_infonce(ref3, pos3, neg3, jnp.float32(1.0))
    assert jnp.allclose(out3['loss'], e3[0], atol=5e-3), (out3['loss'], e3[0])

    # --- test 4: contrast_recon_loss branch ----------------------------------
    ref4 = {'z': ref2, 'recon_loss': jnp.float32(0.25), 'temp': jnp.float32(1.0)}
    pos4 = {'z': pos2, 'recon_loss': jnp.float32(0.5), 'temp': jnp.float32(1.0)}
    neg4 = {'z': neg2, 'recon_loss': jnp.float32(0.75), 'temp': jnp.float32(1.0)}
    out4 = LossFn(nce_type='learnable_cosine')(ref4, pos4, neg4)
    jax.block_until_ready(out4['loss'])
    e4 = _reference_info_nce(ref2, pos2, neg2, 1.0)
    e4_recon = (0.25 + 0.5 + 0.75) / 3
    assert jnp.allclose(out4['contrast_loss'], e4['loss'], atol=1e-4)
    assert jnp.allclose(out4['pos_loss'], e4['pos_loss'], atol=1e-4)
    assert jnp.allclose(out4['neg_loss'], e4['neg_loss'], atol=1e-4)
    assert jnp.allclose(out4['recon_loss'], e4_recon, atol=1e-6)
    assert jnp.allclose(out4['loss'], e4['loss'] + e4_recon, atol=1e-4)

    print("KERNEL_OK")
</pallas_src>

<mosaic_0001>
module attributes {stable_mosaic.version = 11 : i64} {
  func.func @_infonce_kernel(%arg0: i32, %arg1: i32, %arg2: memref<1xf32, #tpu.memory_space<smem>>, %arg3: memref<1xi32, #tpu.memory_space<smem>>, %arg4: memref<128x32xf32, #tpu.memory_space<vmem>>, %arg5: memref<128x32xf32, #tpu.memory_space<vmem>>, %arg6: memref<128x1xf32, #tpu.memory_space<vmem>>, %arg7: memref<128x1xf32, #tpu.memory_space<vmem>>, %arg8: memref<128x32xf32, #tpu.memory_space<vmem>>, %arg9: memref<128x128xf32, #tpu.memory_space<vmem>>, %arg10: memref<128x128xf32, #tpu.memory_space<vmem>>) attributes {dimension_semantics = [#tpu.dimension_semantics<parallel>, #tpu.dimension_semantics<arbitrary>], iteration_bounds = array<i64: 1, 1>, scalar_prefetch = 0 : i64, scratch_operands = 3 : i64, tpu.core_type = #tpu.core_type<tc>, window_params = [{transform_indices = @transform_0, window_bounds = array<i64: 1>}, {transform_indices = @transform_1, window_bounds = array<i64: 1>}, {transform_indices = @transform_2, window_bounds = array<i64: 128, 32>}, {transform_indices = @transform_3, window_bounds = array<i64: 128, 32>}, {transform_indices = @transform_4, window_bounds = array<i64: 128, 1>}, {transform_indices = @transform_5, window_bounds = array<i64: 128, 1>}]} {
    %c0_i32 = arith.constant 0 : i32
    %0 = arith.cmpi eq, %arg1, %c0_i32 : i32
    %1 = arith.extui %0 : i1 to i32
    %c0_i32_0 = arith.constant 0 : i32
    %2 = arith.cmpi ne, %1, %c0_i32_0 : i32
    scf.if %2 {
      %c0_9 = arith.constant 0 : index
      %15 = memref.load %arg2[%c0_9] : memref<1xf32, #tpu.memory_space<smem>>
      %c0_10 = arith.constant 0 : index
      %c0_11 = arith.constant 0 : index
      %16 = vector.load %arg4[%c0_10, %c0_11] : memref<128x32xf32, #tpu.memory_space<vmem>>, vector<128x32xf32>
      %17 = vector.broadcast %15 : f32 to vector<128x32xf32>
      %18 = arith.mulf %16, %17 : vector<128x32xf32>
      %c0_12 = arith.constant 0 : index
      %c0_13 = arith.constant 0 : index
      %19 = vector.load %arg8[%c0_12, %c0_13] : memref<128x32xf32, #tpu.memory_space<vmem>>, vector<128x32xf32>
      tpu.vector_store %arg8[%c0_12, %c0_13], %18 {strides = array<i32>} : memref<128x32xf32, #tpu.memory_space<vmem>>, vector<128x32xf32>,
      %cst_14 = arith.constant -1.000000e+30 : f32
      %20 = vector.broadcast %cst_14 : f32 to vector<128x128xf32>
      %c0_15 = arith.constant 0 : index
      %c0_16 = arith.constant 0 : index
      %21 = vector.load %arg9[%c0_15, %c0_16] : memref<128x128xf32, #tpu.memory_space<vmem>>, vector<128x128xf32>
      tpu.vector_store %arg9[%c0_15, %c0_16], %20 {strides = array<i32>} : memref<128x128xf32, #tpu.memory_space<vmem>>, vector<128x128xf32>,
      %cst_17 = arith.constant 0.000000e+00 : f32
      %22 = vector.broadcast %cst_17 : f32 to vector<128x128xf32>
      %c0_18 = arith.constant 0 : index
      %c0_19 = arith.constant 0 : index
      %23 = vector.load %arg10[%c0_18, %c0_19] : memref<128x128xf32, #tpu.memory_space<vmem>>, vector<128x128xf32>
      tpu.vector_store %arg10[%c0_18, %c0_19], %22 {strides = array<i32>} : memref<128x128xf32, #tpu.memory_space<vmem>>, vector<128x128xf32>,
    } else {
    }
    %c0 = arith.constant 0 : index
    %c0_1 = arith.constant 0 : index
    %3 = vector.load %arg8[%c0, %c0_1] : memref<128x32xf32, #tpu.memory_space<vmem>>, vector<128x32xf32>
    %c0_2 = arith.constant 0 : index
    %c0_3 = arith.constant 0 : index
    %4 = vector.load %arg5[%c0_2, %c0_3] : memref<128x32xf32, #tpu.memory_space<vmem>>, vector<128x32xf32>
    %cst = arith.constant dense<0.000000e+00> : vector<128x128xf32>
    %5 = tpu.matmul %3, %4, %cst {dimension_numbers = #tpu.dot_dimension_numbers<[1], [1], [0], [0], [0, 0, 1, 0], [], []>} : vector<128x32xf32>, vector<128x32xf32>, vector<128x128xf32> -> vector<128x128xf32>
    %c0_i32_4 = arith.constant 0 : i32
    %6 = arith.cmpi eq, %arg1, %c0_i32_4 : i32
    %true = arith.constant true
    %7 = arith.xori %6, %true : i1
    %8 = arith.extui %7 : i1 to i32
    %c0_i32_5 = arith.constant 0 : i32
    %9 = arith.cmpi ne, %8, %c0_i32_5 : i32
    scf.if %9 {
      %c0_9 = arith.constant 0 : index
      %c0_10 = arith.constant 0 : index
      %15 = vector.load %arg9[%c0_9, %c0_10] : memref<128x128xf32, #tpu.memory_space<vmem>>, vector<128x128xf32>
      %16 = arith.maximumf %15, %5 : vector<128x128xf32>
      %17 = arith.subf %15, %16 : vector<128x128xf32>
      %18 = math.exp %17 : vector<128x128xf32>
      %c0_11 = arith.constant 0 : index
      %c0_12 = arith.constant 0 : index
      %19 = vector.load %arg10[%c0_11, %c0_12] : memref<128x128xf32, #tpu.memory_space<vmem>>, vector<128x128xf32>
      %20 = arith.mulf %18, %19 : vector<128x128xf32>
      %21 = arith.subf %5, %16 : vector<128x128xf32>
      %22 = math.exp %21 : vector<128x128xf32>
      %23 = arith.addf %20, %22 : vector<128x128xf32>
      %c0_13 = arith.constant 0 : index
      %c0_14 = arith.constant 0 : index
      %24 = vector.load %arg9[%c0_13, %c0_14] : memref<128x128xf32, #tpu.memory_space<vmem>>, vector<128x128xf32>
      tpu.vector_store %arg9[%c0_13, %c0_14], %16 {strides = array<i32>} : memref<128x128xf32, #tpu.memory_space<vmem>>, vector<128x128xf32>,
      %c0_15 = arith.constant 0 : index
      %c0_16 = arith.constant 0 : index
      %25 = vector.load %arg10[%c0_15, %c0_16] : memref<128x128xf32, #tpu.memory_space<vmem>>, vector<128x128xf32>
      tpu.vector_store %arg10[%c0_15, %c0_16], %23 {strides = array<i32>} : memref<128x128xf32, #tpu.memory_space<vmem>>, vector<128x128xf32>,
    } else {
    }
    %10 = arith.extui %6 : i1 to i32
    %c0_i32_6 = arith.constant 0 : i32
    %11 = arith.cmpi ne, %10, %c0_i32_6 : i32
    scf.if %11 {
      %c128_i32 = arith.constant 128 : i32
      %15 = arith.muli %arg1, %c128_i32 : i32
      %16 = tpu.iota {dimensions = array<i32: 1>} : vector<1x128xi32>
      %17 = vector.broadcast %15 : i32 to vector<1x128xi32>
      %18 = arith.addi %17, %16 : vector<1x128xi32>
      %c0_9 = arith.constant 0 : index
      %19 = memref.load %arg3[%c0_9] : memref<1xi32, #tpu.memory_space<smem>>
      %20 = vector.broadcast %19 : i32 to vector<1x128xi32>
      %21 = arith.cmpi slt, %18, %20 : vector<1x128xi32>
      %cst_10 = arith.constant -1.000000e+30 : f32
      %22 = vector.shape_cast %21 : vector<1x128xi1> to vector<1x128xi1>
      %23 = vector.broadcast %22 : vector<1x128xi1> to vector<128x128xi1>
      %24 = vector.broadcast %cst_10 : f32 to vector<128x128xf32>
      %25 = arith.select %23, %5, %24 : vector<128x128xi1>, vector<128x128xf32>
      %c0_11 = arith.constant 0 : index
      %c0_12 = arith.constant 0 : index
      %26 = vector.load %arg9[%c0_11, %c0_12] : memref<128x128xf32, #tpu.memory_space<vmem>>, vector<128x128xf32>
      %27 = arith.maximumf %26, %25 : vector<128x128xf32>
      %28 = arith.subf %26, %27 : vector<128x128xf32>
      %29 = math.exp %28 : vector<128x128xf32>
      %c0_13 = arith.constant 0 : index
      %c0_14 = arith.constant 0 : index
      %30 = vector.load %arg10[%c0_13, %c0_14] : memref<128x128xf32, #tpu.memory_space<vmem>>, vector<128x128xf32>
      %31 = arith.mulf %29, %30 : vector<128x128xf32>
      %32 = arith.subf %25, %27 : vector<128x128xf32>
      %33 = math.exp %32 : vector<128x128xf32>
      %34 = arith.addf %31, %33 : vector<128x128xf32>
      %c0_15 = arith.constant 0 : index
      %c0_16 = arith.constant 0 : index
      %35 = vector.load %arg9[%c0_15, %c0_16] : memref<128x128xf32, #tpu.memory_space<vmem>>, vector<128x128xf32>
      tpu.vector_store %arg9[%c0_15, %c0_16], %27 {strides = array<i32>} : memref<128x128xf32, #tpu.memory_space<vmem>>, vector<128x128xf32>,
      %c0_17 = arith.constant 0 : index
      %c0_18 = arith.constant 0 : index
      %36 = vector.load %arg10[%c0_17, %c0_18] : memref<128x128xf32, #tpu.memory_space<vmem>>, vector<128x128xf32>
      tpu.vector_store %arg10[%c0_17, %c0_18], %34 {strides = array<i32>} : memref<128x128xf32, #tpu.memory_space<vmem>>, vector<128x128xf32>,
    } else {
    }
    %c0_i32_7 = arith.constant 0 : i32
    %12 = arith.cmpi eq, %arg1, %c0_i32_7 : i32
    %13 = arith.extui %12 : i1 to i32
    %c0_i32_8 = arith.constant 0 : i32
    %14 = arith.cmpi ne, %13, %c0_i32_8 : i32
    scf.if %14 {
      %c0_9 = arith.constant 0 : index
      %c0_10 = arith.constant 0 : index
      %15 = vector.load %arg9[%c0_9, %c0_10] : memref<128x128xf32, #tpu.memory_space<vmem>>, vector<128x128xf32>
      %c0_11 = arith.constant 0 : index
      %c0_12 = arith.constant 0 : index
      %16 = vector.load %arg10[%c0_11, %c0_12] : memref<128x128xf32, #tpu.memory_space<vmem>>, vector<128x128xf32>
      %cst_13 = arith.constant dense<0xFF800000> : vector<128xf32>
      %17 = vector.multi_reduction <maximumf>, %15, %cst_13 [1] : vector<128x128xf32> to vector<128xf32>
      %18 = vector.shape_cast %17 : vector<128xf32> to vector<128x1xf32>
      %19 = vector.broadcast %18 : vector<128x1xf32> to vector<128x128xf32>
      %20 = arith.subf %15, %19 : vector<128x128xf32>
      %21 = math.exp %20 : vector<128x128xf32>
      %22 = arith.mulf %16, %21 : vector<128x128xf32>
      %cst_14 = arith.constant dense<0.000000e+00> : vector<128xf32>
      %23 = vector.multi_reduction <add>, %22, %cst_14 [1] : vector<128x128xf32> to vector<128xf32>
      %24 = vector.shape_cast %23 : vector<128xf32> to vector<128x1xf32>
      %25 = math.log %24 : vector<128x1xf32>
      %26 = arith.addf %18, %25 : vector<128x1xf32>
      %c0_15 = arith.constant 0 : index
      %c0_16 = arith.constant 0 : index
      %27 = vector.load %arg6[%c0_15, %c0_16] : memref<128x1xf32, #tpu.memory_space<vmem>>, vector<128x1xf32>
      tpu.vector_store %arg6[%c0_15, %c0_16], %26 {strides = array<i32>} : memref<128x1xf32, #tpu.memory_space<vmem>>, vector<128x1xf32>,
      %c0_17 = arith.constant 0 : index
      %c0_18 = arith.constant 0 : index
      %28 = vector.load %arg7[%c0_17, %c0_18] : memref<128x1xf32, #tpu.memory_space<vmem>>, vector<128x1xf32>
      tpu.vector_store %arg7[%c0_17, %c0_18], %18 {strides = array<i32>} : memref<128x1xf32, #tpu.memory_space<vmem>>, vector<128x1xf32>,
    } else {
    }
    return
  }
  func.func @transform_0(%arg0: i32, %arg1: i32) -> i32 {
    %c0_i32 = arith.constant 0 : i32
    %c0_i32_0 = arith.constant 0 : i32
    return %c0_i32 : i32
  }
  func.func @transform_1(%arg0: i32, %arg1: i32) -> i32 {
    %c0_i32 = arith.constant 0 : i32
    %c0_i32_0 = arith.constant 0 : i32
    return %c0_i32 : i32
  }
  func.func @transform_2(%arg0: i32, %arg1: i32) -> (i32, i32) {
    %c0_i32 = arith.constant 0 : i32
    %c0_i32_0 = arith.constant 0 : i32
    return %arg0, %c0_i32 : i32, i32
  }
  func.func @transform_3(%arg0: i32, %arg1: i32) -> (i32, i32) {
    %c0_i32 = arith.constant 0 : i32
    %c0_i32_0 = arith.constant 0 : i32
    return %arg1, %c0_i32 : i32, i32
  }
  func.func @transform_4(%arg0: i32, %arg1: i32) -> (i32, i32) {
    %c0_i32 = arith.constant 0 : i32
    %c0_i32_0 = arith.constant 0 : i32
    return %arg0, %c0_i32 : i32, i32
  }
  func.func @transform_5(%arg0: i32, %arg1: i32) -> (i32, i32) {
    %c0_i32 = arith.constant 0 : i32
    %c0_i32_0 = arith.constant 0 : i32
    return %arg0, %c0_i32 : i32, i32
  }
}

</mosaic_0001>

<bundles_post_ra>
// kernel: tpu_custom_call.1
= control target key start
LH: loop header
LB: loop body
LE: loop exit
PB: predicated region body
PF: predicated region fallthrough
CT: control target
= control target key end

     0   :  { %vm59_vm0 = vcmask 261120   ;;  %vm1039_vm3 = vcmask 7168   ;;  %s2035_s3 = inlined_call_operand.vmem [shape: f32[128,32], index: 3, kind: input, shape index: {}]   ;;  %s2036_s0 = inlined_call_operand.<no memory space> [shape: f32[1], index: 0, kind: input, shape index: {}]   ;;  %s2037_s2 = inlined_call_operand.vmem [shape: f32[128,32], index: 2, kind: input, shape index: {}]   ;;  %s2038_s1 = inlined_call_operand.<no memory space> [shape: s32[1], index: 1, kind: input, shape index: {}]   ;;  %s2039_s5 = inlined_call_operand.vmem [shape: f32[128,1], index: 5, kind: output, shape index: {1}]   ;;  %s2040_s4 = inlined_call_operand.vmem [shape: f32[128,1], index: 4, kind: output, shape index: {0}]  }
   0x1   :  { %v124_v0 = vld [vmem:[%s2035_s3] sm:$0xff]  ;;  %v125_v1 = vld [vmem:[%s2035_s3 + $0x8] sm:$0xff]  ;;  %vm1430_vm1 = vmpackc.low %vm59_vm0, %vm59_vm0  ;;  %v42_v7 = vstv %s2036_s0 }
   0x2   :  { %v1200_v3 = vpack.c.bf16 %v125_v1, %v124_v0  ;;  %v126_v4 = vld [vmem:[%s2035_s3 + $0x10] sm:$0xff]  ;;  %v127_v5 = vld [vmem:[%s2035_s3 + $0x18] sm:$0xff]  ;;  %v128_v8 = vld [vmem:[%s2035_s3 + $0x20] sm:$0xff] }
   0x3   :  { %v1206_v6 = vpack.c.bf16 %v127_v5, %v126_v4  ;;  %v129_v9 = vld [vmem:[%s2035_s3 + $0x28] sm:$0xff]  ;;  %v26_v10 = vld [vmem:[%s2037_s2] sm:$0xff]  ;;  %v28_v18 = vld [vmem:[%s2037_s2 + $0x10] sm:$0xff] }
   0x4   :  { %1202 = vmatprep.subr.msk.bf16.mxu0 %vm1430_vm1, %v1200_v3  ;;  %1248 = vmatprep.subr.msk.bf16.mxu1 %vm1430_vm1, %v1200_v3  ;;  %v43_v11 = vmul.f32 %v42_v7, %v26_v10  ;;  %v34_v12 = vld [vmem:[%s2037_s2 + $0x40] sm:$0xff]  ;;  %v27_v13 = vld [vmem:[%s2037_s2 + $0x8] sm:$0xff]  ;;  %v36_v19 = vld [vmem:[%s2037_s2 + $0x50] sm:$0xff]  ;;  %v45_v21 = vmul.f32 %v42_v7, %v28_v18  ;;  %v1212_v27 = vpack.c.bf16 %v129_v9, %v128_v8  ;;  %v598_v10 = vlaneseq }
   0x5   :  { %1205 = vmatpush3.bf16.xpose.msk.msra.mxu0 %vm1430_vm1, %v1200_v3  ;;  %1256 = vmatpush3.bf16.xpose.msk.msra.mxu1 %vm1430_vm1, %v1200_v3  ;;  %v35_v14 = vld [vmem:[%s2037_s2 + $0x48] sm:$0xff]  ;;  %v51_v15 = vmul.f32 %v42_v7, %v34_v12  ;;  %v44_v16 = vmul.f32 %v42_v7, %v27_v13  ;;  %v29_v20 = vld [vmem:[%s2037_s2 + $0x18] sm:$0xff]  ;;  %v53_v22 = vmul.f32 %v42_v7, %v36_v19  ;;  %v30_v25 = vld [vmem:[%s2037_s2 + $0x20] sm:$0xff]  ;;  %v603_v12 = vstv %s2038_s1 }
   0x6   :  { %1208 = vmatprep.subr.msk.bf16.mxu0 %vm1430_vm1, %v1206_v6  ;;  %1249 = vmatprep.subr.msk.bf16.mxu1 %vm1430_vm1, %v1206_v6  ;;  %v52_v17 = vmul.f32 %v42_v7, %v35_v14  ;;  %60 = vst.msk [vmem:[#allocation2] sm:$0xff] %vm59_vm0, %v43_v11  ;;  %v46_v23 = vmul.f32 %v42_v7, %v29_v20  ;;  %v37_v24 = vld [vmem:[%s2037_s2 + $0x58] sm:$0xff]  ;;  %v31_v26 = vld [vmem:[%s2037_s2 + $0x28] sm:$0xff]  ;;  %v38_v31 = vld [vmem:[%s2037_s2 + $0x60] sm:$0xff]  ;;  %v599_v11 = vand.u32 127, %v598_v10 }
   0x7   :  { %68 = vst.msk [vmem:[#allocation2 + $0x40] sm:$0xff] %vm59_vm0, %v51_v15  ;;  %61 = vst.msk [vmem:[#allocation2 + $0x8] sm:$0xff] %vm59_vm0, %v44_v16  ;;  %v54_v28 = vmul.f32 %v42_v7, %v37_v24  ;;  %v47_v29 = vmul.f32 %v42_v7, %v30_v25  ;;  %v48_v30 = vmul.f32 %v42_v7, %v31_v26  ;;  %v39_v32 = vld [vmem:[%s2037_s2 + $0x68] sm:$0xff]  ;;  %v32_v33 = vld [vmem:[%s2037_s2 + $0x30] sm:$0xff] }
   0x8   :  { %69 = vst.msk [vmem:[#allocation2 + $0x48] sm:$0xff] %vm59_vm0, %v52_v17  ;;  %62 = vst.msk [vmem:[#allocation2 + $0x10] sm:$0xff] %vm59_vm0, %v45_v21  ;;  %v55_v34 = vmul.f32 %v42_v7, %v38_v31  ;;  %v56_v35 = vmul.f32 %v42_v7, %v39_v32  ;;  %v49_v36 = vmul.f32 %v42_v7, %v32_v33  ;;  %v33_v37 = vld [vmem:[%s2037_s2 + $0x38] sm:$0xff]  ;;  %v40_v38 = vld [vmem:[%s2037_s2 + $0x70] sm:$0xff] }
   0x9   :  { %70 = vst.msk [vmem:[#allocation2 + $0x50] sm:$0xff] %vm59_vm0, %v53_v22  ;;  %63 = vst.msk [vmem:[#allocation2 + $0x18] sm:$0xff] %vm59_vm0, %v46_v23  ;;  %v41_v39 = vld [vmem:[%s2037_s2 + $0x78] sm:$0xff]  ;;  %v50_v40 = vmul.f32 %v42_v7, %v33_v37  ;;  %v57_v41 = vmul.f32 %v42_v7, %v40_v38  ;;  %v130_v43 = vld [vmem:[%s2035_s3 + $0x30] sm:$0xff]  ;;  %vm1626_vm2 = vcmp.lt.s32.totalorder %v599_v11, %v603_v12 }
   0xa   :  { %71 = vst.msk [vmem:[#allocation2 + $0x58] sm:$0xff] %vm59_vm0, %v54_v28  ;;  %64 = vst.msk [vmem:[#allocation2 + $0x20] sm:$0xff] %vm59_vm0, %v47_v29  ;;  %v58_v42 = vmul.f32 %v42_v7, %v41_v39  ;;  %v131_v44 = vld [vmem:[%s2035_s3 + $0x38] sm:$0xff]  ;;  %v132_v48 = vld [vmem:[%s2035_s3 + $0x40] sm:$0xff] }
   0xb   :  { %65 = vst.msk [vmem:[#allocation2 + $0x28] sm:$0xff] %vm59_vm0, %v48_v30  ;;  %72 = vst.msk [vmem:[#allocation2 + $0x60] sm:$0xff] %vm59_vm0, %v55_v34  ;;  %v1218_v47 = vpack.c.bf16 %v131_v44, %v130_v43  ;;  %v133_v49 = vld [vmem:[%s2035_s3 + $0x48] sm:$0xff]  ;;  %v134_v51 = vld [vmem:[%s2035_s3 + $0x50] sm:$0xff] }
   0xc   :  { %73 = vst.msk [vmem:[#allocation2 + $0x68] sm:$0xff] %vm59_vm0, %v56_v35  ;;  %66 = vst.msk [vmem:[#allocation2 + $0x30] sm:$0xff] %vm59_vm0, %v49_v36  ;;  %v1224_v50 = vpack.c.bf16 %v133_v49, %v132_v48  ;;  %v135_v52 = vld [vmem:[%s2035_s3 + $0x58] sm:$0xff]  ;;  %v136_v54 = vld [vmem:[%s2035_s3 + $0x60] sm:$0xff] }
   0xd   :  { %1211 = vmatpush3.bf16.xpose.msk.msra.mxu0 %vm1430_vm1, %v1206_v6  ;;  %1257 = vmatpush3.bf16.xpose.msk.msra.mxu1 %vm1430_vm1, %v1206_v6  ;;  %67 = vst.msk [vmem:[#allocation2 + $0x38] sm:$0xff] %vm59_vm0, %v50_v40  ;;  %74 = vst.msk [vmem:[#allocation2 + $0x70] sm:$0xff] %vm59_vm0, %v57_v41  ;;  %v108_v45 = vld [vmem:[#allocation2] sm:$0xff]  ;;  %v1230_v53 = vpack.c.bf16 %v135_v52, %v134_v51  ;;  %v137_v55 = vld [vmem:[%s2035_s3 + $0x68] sm:$0xff] }
   0xe   :  { %1214 = vmatprep.subr.msk.bf16.mxu0 %vm1430_vm1, %v1212_v27  ;;  %1250 = vmatprep.subr.msk.bf16.mxu1 %vm1430_vm1, %v1212_v27  ;;  %75 = vst.msk [vmem:[#allocation2 + $0x78] sm:$0xff] %vm59_vm0, %v58_v42  ;;  %v116_v46 = vld [vmem:[#allocation2 + $0x40] sm:$0xff]  ;;  %v1236_v56 = vpack.c.bf16 %v137_v55, %v136_v54  ;;  %v138_v57 = vld [vmem:[%s2035_s3 + $0x70] sm:$0xff]  ;;  %v139_v58 = vld [vmem:[%s2035_s3 + $0x78] sm:$0xff] }
   0xf   :  { %1176 = vmatprep.mubr.msk.f32.mxu0 %vm59_vm0, %v108_v45  ;;  %1188 = vmatprep.mubr.msk.f32.mxu1 %vm59_vm0, %v116_v46  ;;  %v1242_v59 = vpack.c.bf16 %v139_v58, %v138_v57  ;;  %v109_v60 = vld [vmem:[#allocation2 + $0x8] sm:$0xff]  ;;  %v110_v62 = vld [vmem:[#allocation2 + $0x10] sm:$0xff] }
  0x10   :  { %v117_v61 = vld [vmem:[#allocation2 + $0x48] sm:$0xff]  ;;  %v118_v63 = vld [vmem:[#allocation2 + $0x50] sm:$0xff]  ;;  %v111_v0 = vld [vmem:[#allocation2 + $0x18] sm:$0xff] }
  0x11   :  { %v119_v1 = vld [vmem:[#allocation2 + $0x58] sm:$0xff]  ;;  %v112_v3 = vld [vmem:[#allocation2 + $0x20] sm:$0xff] }
  0x12   :  { %v120_v4 = vld [vmem:[#allocation2 + $0x60] sm:$0xff]  ;;  %v113_v2 = vld [vmem:[#allocation2 + $0x28] sm:$0xff] }
  0x13   :  { %v121_v5 = vld [vmem:[#allocation2 + $0x68] sm:$0xff]  ;;  %v114_v6 = vld [vmem:[#allocation2 + $0x30] sm:$0xff] }
  0x14   :  { %v122_v7 = vld [vmem:[#allocation2 + $0x70] sm:$0xff]  ;;  %v115_v8 = vld [vmem:[#allocation2 + $0x38] sm:$0xff] }
  0x15   :  { %1217 = vmatpush3.bf16.xpose.msk.msra.mxu0 %vm1430_vm1, %v1212_v27  ;;  %1258 = vmatpush3.bf16.xpose.msk.msra.mxu1 %vm1430_vm1, %v1212_v27  ;;  %v123_v9 = vld [vmem:[#allocation2 + $0x78] sm:$0xff] }
  0x16   :  { %1220 = vmatprep.subr.msk.bf16.mxu0 %vm1430_vm1, %v1218_v47  ;;  %1251 = vmatprep.subr.msk.bf16.mxu1 %vm1430_vm1, %v1218_v47 }
  0x1d   :  { %1223 = vmatpush3.bf16.xpose.msk.msra.mxu0 %vm1430_vm1, %v1218_v47  ;;  %1259 = vmatpush3.bf16.xpose.msk.msra.mxu1 %vm1430_vm1, %v1218_v47 }
  0x1e   :  { %1226 = vmatprep.subr.msk.bf16.mxu0 %vm1430_vm1, %v1224_v50  ;;  %1252 = vmatprep.subr.msk.bf16.mxu1 %vm1430_vm1, %v1224_v50 }
  0x25   :  { %1229 = vmatpush3.bf16.xpose.msk.msra.mxu0 %vm1430_vm1, %v1224_v50  ;;  %1260 = vmatpush3.bf16.xpose.msk.msra.mxu1 %vm1430_vm1, %v1224_v50 }
  0x26   :  { %1232 = vmatprep.subr.msk.bf16.mxu0 %vm1430_vm1, %v1230_v53  ;;  %1253 = vmatprep.subr.msk.bf16.mxu1 %vm1430_vm1, %v1230_v53 }
  0x2d   :  { %1235 = vmatpush3.bf16.xpose.msk.msra.mxu0 %vm1430_vm1, %v1230_v53  ;;  %1261 = vmatpush3.bf16.xpose.msk.msra.mxu1 %vm1430_vm1, %v1230_v53 }
  0x2e   :  { %1238 = vmatprep.subr.msk.bf16.mxu0 %vm1430_vm1, %v1236_v56  ;;  %1254 = vmatprep.subr.msk.bf16.mxu1 %vm1430_vm1, %v1236_v56 }
  0x35   :  { %1241 = vmatpush3.bf16.xpose.msk.msra.mxu0 %vm1430_vm1, %v1236_v56  ;;  %1262 = vmatpush3.bf16.xpose.msk.msra.mxu1 %vm1430_vm1, %v1236_v56 }
  0x36   :  { %1244 = vmatprep.subr.msk.bf16.mxu0 %vm1430_vm1, %v1242_v59  ;;  %1255 = vmatprep.subr.msk.bf16.mxu1 %vm1430_vm1, %v1242_v59 }
  0x3d   :  { %1247 = vmatpush3.bf16.xpose.msk.msra.mxu0 %vm1430_vm1, %v1242_v59  ;;  %1263 = vmatpush3.bf16.xpose.msk.msra.mxu1 %vm1430_vm1, %v1242_v59 }
  0x44   :  { %1177 = vmatmul.mubr.msk.f32.vlgmr.msra.gmra.mrb[0].mxu0 %vm59_vm0, %v109_v60  ;;  %1189 = vmatmul.mubr.msk.f32.vlgmr.msra.gmra.mrb[0].mxu1 %vm59_vm0, %v117_v61 }
  0x45   :  { %1179 = vmatprep.mubr.msk.f32.mxu0 %vm59_vm0, %v110_v62  ;;  %1191 = vmatprep.mubr.msk.f32.mxu1 %vm59_vm0, %v118_v63 }
  0x48   :  { %1180 = vmatmul.mubr.msk.f32.gmra.mrb[2].mxu0 %vm59_vm0, %v111_v0  ;;  %1192 = vmatmul.mubr.msk.f32.gmra.mrb[2].mxu1 %vm59_vm0, %v119_v1 }
  0x49   :  { %1182 = vmatprep.mubr.msk.f32.mxu0 %vm59_vm0, %v112_v3  ;;  %1194 = vmatprep.mubr.msk.f32.mxu1 %vm59_vm0, %v120_v4 }
  0x4c   :  { %1183 = vmatmul.mubr.msk.f32.gmra.mrb[4].mxu0 %vm59_vm0, %v113_v2  ;;  %1195 = vmatmul.mubr.msk.f32.gmra.mrb[4].mxu1 %vm59_vm0, %v121_v5 }
  0x4d   :  { %1185 = vmatprep.mubr.msk.f32.mxu0 %vm59_vm0, %v114_v6  ;;  %1197 = vmatprep.mubr.msk.f32.mxu1 %vm59_vm0, %v122_v7 }
  0x50   :  { %1186 = vmatmul.mubr.msk.f32.gmra.mrb[6].mxu0 %vm59_vm0, %v115_v8  ;;  %1198 = vmatmul.mubr.msk.f32.gmra.mrb[6].mxu1 %vm59_vm0, %v123_v9 }
 0x117   :  { %v1178_v14 = vpop.f32.mrb[0].mxu0  ;;  %v1190_v15 = vpop.f32.mrb[0].mxu1 }
 0x118   :  { %v1632_v16 = vsel %vm1626_vm2, %v1178_v14, -1e+30  ;;  %v1636_v17 = vsel %vm1626_vm2, %v1190_v15, -1e+30  ;;  %v303_v18 = vpop.f32.mrb[1].mxu0  ;;  %v343_v19 = vpop.f32.mrb[1].mxu1 }
 0x119   :  { %v1639_v20 = vmax.f32 %v1632_v16, -1e+30  ;;  %v1642_v21 = vmax.f32 %v1636_v17, -1e+30  ;;  %v1646_v22 = vsel %vm1626_vm2, %v303_v18, -1e+30 }
 0x11a   :  { %v1655_v28 = vmax.f32 %v1646_v22, -1e+30  ;;  %v615_v29 = vsel %vm1626_vm2, %v343_v19, -1e+30 }
 0x11b   :  { %881 = vmax.xlane.f32.xlu1 %v1642_v21  ;;  %v1193_v23 = vpop.f32.mrb[2].mxu1  ;;  %865 = vmax.xlane.f32.xlu0 %v1639_v20  ;;  %v1181_v24 = vpop.f32.mrb[2].mxu0  ;;  %v1666_v36 = vmax.f32 %v615_v29, -1e+30  ;;  %v736_v62 = vsub.f32 %v1632_v16, %v1639_v20  ;;  %v744_v63 = vsub.f32 %v1636_v17, %v1642_v21  ;;  %v656_v19 = vsub.f32 -1e+30, %v1639_v20 }
 0x11c   :  { %v1652_v25 = vsel %vm1626_vm2, %v1181_v24, -1e+30  ;;  %v313_v26 = vpop.f32.mrb[3].mxu0  ;;  %v353_v27 = vpop.f32.mrb[3].mxu1  ;;  %v618_v31 = vsel %vm1626_vm2, %v1193_v23, -1e+30  ;;  %v735_v0 = vsub.f32 %v1646_v22, %v1655_v28 }
 0x11d   :  { %v1660_v30 = vmax.f32 %v1652_v25, -1e+30  ;;  %v1668_v37 = vmax.f32 %v618_v31, -1e+30  ;;  %v617_v38 = vsel %vm1626_vm2, %v353_v27, -1e+30  ;;  %v743_v1 = vsub.f32 %v615_v29, %v1666_v36 }
 0x11e   :  { %v609_v39 = vsel %vm1626_vm2, %v313_v26, -1e+30  ;;  %v1678_v45 = vmax.f32 %v617_v38, -1e+30  ;;  %v753_v3 = vmul.f32 1.442695, %v736_v62 }
 0x11f   :  { %863 = vmax.xlane.f32.xlu0 %v1655_v28  ;;  %v1184_v32 = vpop.f32.mrb[4].mxu0  ;;  %v1196_v33 = vpop.f32.mrb[4].mxu1  ;;  %869 = vmax.xlane.f32.xlu1 %v1660_v30  ;;  %v1682_v47 = vmax.f32 %v609_v39, -1e+30  ;;  %v746_v4 = vsub.f32 %v618_v31, %v1668_v37  ;;  %v769_v2 = vmul.f32 1.442695, %v744_v63  ;;  %v738_v5 = vsub.f32 %v1652_v25, %v1660_v30 }
 0x120   :  { %v323_v34 = vpop.f32.mrb[5].mxu0  ;;  %v363_v35 = vpop.f32.mrb[5].mxu1  ;;  %v612_v46 = vsel %vm1626_vm2, %v1184_v32, -1e+30  ;;  %v620_v51 = vsel %vm1626_vm2, %v1196_v33, -1e+30  ;;  %v745_v9 = vsub.f32 %v617_v38, %v1678_v45  ;;  %1264 = vpow2.f32 %v753_v3 }
 0x121   :  { %v611_v42 = vsel %vm1626_vm2, %v323_v34, -1e+30  ;;  %v1687_v49 = vmax.f32 %v612_v46, -1e+30  ;;  %v619_v50 = vsel %vm1626_vm2, %v363_v35, -1e+30  ;;  %v737_v7 = vsub.f32 %v609_v39, %v1682_v47 }
 0x122   :  { %v1684_v48 = vmax.f32 %v611_v42, -1e+30  ;;  %v1694_v52 = vmax.f32 %v619_v50, -1e+30  ;;  %v1697_v53 = vmax.f32 %v620_v51, -1e+30  ;;  %1266 = vpow2.f32 %v769_v2 }
 0x123   :  { %879 = vmax.xlane.f32.xlu0 %v1666_v36  ;;  %v1187_v40 = vpop.f32.mrb[6].mxu0  ;;  %v1199_v41 = vpop.f32.mrb[6].mxu1  ;;  %885 = vmax.xlane.f32.xlu1 %v1668_v37  ;;  %v751_v6 = vmul.f32 1.442695, %v735_v0  ;;  %v767_v8 = vmul.f32 1.442695, %v743_v1  ;;  %v740_v11 = vsub.f32 %v612_v46, %v1687_v49 }
 0x124   :  { %v333_v43 = vpop.f32.mrb[7].mxu0  ;;  %v373_v44 = vpop.f32.mrb[7].mxu1  ;;  %v614_v55 = vsel %vm1626_vm2, %v1187_v40, -1e+30  ;;  %v1716_v59 = vsel %vm1626_vm2, %v1199_v41, -1e+30  ;;  %v739_v13 = vsub.f32 %v611_v42, %v1684_v48  ;;  %v748_v15 = vsub.f32 %v620_v51, %v1697_v53 }
 0x125   :  { %v613_v54 = vsel %vm1626_vm2, %v333_v43, -1e+30  ;;  %v1707_v57 = vmax.f32 %v614_v55, -1e+30  ;;  %v1712_v58 = vsel %vm1626_vm2, %v373_v44, -1e+30  ;;  %1268 = vpow2.f32 %v751_v6 }
 0x126   :  { %v1704_v56 = vmax.f32 %v613_v54, -1e+30  ;;  %v1719_v60 = vmax.f32 %v1712_v58, -1e+30  ;;  %v1723_v61 = vmax.f32 %v1716_v59, -1e+30  ;;  %1270 = vpow2.f32 %v767_v8 }
 0x127   :  { %883 = vmax.xlane.f32.xlu0 %v1678_v45  ;;  %867 = vmax.xlane.f32.xlu1 %v1682_v47  ;;  %v773_v10 = vmul.f32 1.442695, %v746_v4  ;;  %v757_v12 = vmul.f32 1.442695, %v738_v5  ;;  %v755_v14 = vmul.f32 1.442695, %v737_v7  ;;  %v747_v17 = vsub.f32 %v619_v50, %v1694_v52 }
 0x128   :  { %v771_v16 = vmul.f32 1.442695, %v745_v9  ;;  %v761_v18 = vmul.f32 1.442695, %v740_v11  ;;  %v759_v22 = vmul.f32 1.442695, %v739_v13  ;;  %v742_v23 = vsub.f32 %v614_v55, %v1707_v57 }
 0x129   :  { %1272 = vpow2.f32 %v773_v10  ;;  %v777_v24 = vmul.f32 1.442695, %v748_v15  ;;  %v741_v25 = vsub.f32 %v613_v54, %v1704_v56  ;;  %v775_v26 = vmul.f32 1.442695, %v747_v17 }
 0x12a   :  { %1274 = vpow2.f32 %v757_v12  ;;  %v655_v27 = vsub.f32 -1e+30, %v1655_v28  ;;  %v673_v29 = vmul.f32 1.442695, %v656_v19  ;;  %v664_v31 = vsub.f32 -1e+30, %v1642_v21  ;;  %v1751_v34 = vpop.eup %1264 }
 0x12b   :  { %871 = vmax.xlane.f32.xlu0 %v1684_v48  ;;  %873 = vmax.xlane.f32.xlu1 %v1687_v49  ;;  %1276 = vpow2.f32 %v755_v14  ;;  %v765_v32 = vmul.f32 1.442695, %v742_v23  ;;  %v750_v33 = vsub.f32 %v1716_v59, %v1723_v61  ;;  %v763_v35 = vmul.f32 1.442695, %v741_v25 }
 0x12c   :  { %1278 = vpow2.f32 %v771_v16  ;;  %v658_v38 = vsub.f32 -1e+30, %v1660_v30  ;;  %v1754_v39 = vpop.eup %1266  ;;  %v671_v40 = vmul.f32 1.442695, %v655_v27  ;;  %v663_v41 = vsub.f32 -1e+30, %v1666_v36 }
 0x12d   :  { %1280 = vpow2.f32 %v761_v18  ;;  %v689_v43 = vmul.f32 1.442695, %v664_v31  ;;  %v781_v46 = vmul.f32 1.442695, %v750_v33  ;;  %v666_v50 = vsub.f32 -1e+30, %v1668_v37 }
 0x12e   :  { %1282 = vpow2.f32 %v759_v22  ;;  %v677_v59 = vmul.f32 1.442695, %v658_v38  ;;  %v687_v1 = vmul.f32 1.442695, %v663_v41  ;;  %v665_v12 = vsub.f32 -1e+30, %v1678_v45 }
 0x12f   :  { %887 = vmax.xlane.f32.xlu0 %v1694_v52  ;;  %889 = vmax.xlane.f32.xlu1 %v1697_v53  ;;  %1284 = vpow2.f32 %v777_v24  ;;  %v1757_v42 = vpop.eup %1268  ;;  %v693_v5 = vmul.f32 1.442695, %v666_v50  ;;  %v668_v15 = vsub.f32 -1e+30, %v1697_v53  ;;  %v662_v38 = vsub.f32 -1e+30, %v1707_v57 }
 0x130   :  { %1286 = vpow2.f32 %v775_v26  ;;  %v1759_v44 = vpop.eup %1270  ;;  %v659_v26 = vsub.f32 -1e+30, %v1684_v48 }
 0x131   :  { %1288 = vpow2.f32 %v673_v29  ;;  %v697_v31 = vmul.f32 1.442695, %v668_v15 }
 0x132   :  { %1290 = vpow2.f32 %v765_v32 }
 0x133   :  { %875 = vmax.xlane.f32.xlu0 %v1704_v56  ;;  %877 = vmax.xlane.f32.xlu1 %v1707_v57  ;;  %v1762_v51 = vpop.eup %1272  ;;  %1292 = vpow2.f32 %v763_v35 }
 0x134   :  { %v1768_v62 = vpop.eup %1274  ;;  %1294 = vpow2.f32 %v671_v40 }
 0x135   :  { %v1784_v3 = vpop.eup %1276  ;;  %1296 = vpow2.f32 %v689_v43 }
 0x136   :  { %v1787_v4 = vpop.eup %1278  ;;  %1298 = vpow2.f32 %v781_v46 }
 0x137   :  { %891 = vmax.xlane.f32.xlu0 %v1719_v60  ;;  %893 = vmax.xlane.f32.xlu1 %v1723_v61  ;;  %v1790_v6 = vpop.eup %1280  ;;  %1300 = vpow2.f32 %v677_v59 }
 0x138   :  { %v1794_v9 = vpop.eup %1282  ;;  %1302 = vpow2.f32 %v687_v1 }
 0x139   :  { %v1806_v13 = vpop.eup %1284 }
 0x13a   :  { %v1816_v16 = vpop.eup %1286 }
 0x13b   :  { %v1289_v19 = vpop.eup %1288 }
 0x13c   :  { %v720_v35 = vmul.f32 0.0, %v1289_v19 }
 0x1a8   :  { %v1764_v54 = vpop.xlane.xlu1 %881  ;;  %v1766_v55 = vpop.xlane.xlu0 %865 }
 0x1a9   :  { %v904_v63 = vsub.f32 %v1642_v21, %v1764_v54  ;;  %1065 = vst.msk [vmem:[%s2039_s5 + $0x48] sm:$0xff] %vm1039_vm3, %v1764_v54  ;;  %v896_v0 = vsub.f32 %v1639_v20, %v1766_v55  ;;  %1057 = vst.msk [vmem:[%s2039_s5 + $0x8] sm:$0xff] %vm1039_vm3, %v1766_v55  ;;  %v657_v21 = vsub.f32 -1e+30, %v1682_v47  ;;  %v660_v20 = vsub.f32 -1e+30, %v1687_v49 }
 0x1ab   :  { %v913_v2 = vmul.f32 1.442695, %v896_v0  ;;  %v929_v7 = vmul.f32 1.442695, %v904_v63  ;;  %v681_v18 = vmul.f32 1.442695, %v660_v20  ;;  %v784_v20 = vadd.f32 %v1751_v34, %v720_v35 }
 0x1ac   :  { %v1792_v8 = vpop.xlane.xlu0 %863  ;;  %v1803_v11 = vpop.xlane.xlu1 %869  ;;  %v679_v63 = vmul.f32 1.442695, %v659_v26  ;;  %v670_v0 = vsub.f32 -1e+30, %v1723_v61 }
 0x1ad   :  { %v895_v10 = vsub.f32 %v1655_v28, %v1792_v8  ;;  %1056 = vst.msk [vmem:[%s2039_s5] sm:$0xff] %vm1039_vm3, %v1792_v8  ;;  %1304 = vpow2.f32 %v913_v2  ;;  %v898_v14 = vsub.f32 %v1660_v30, %v1803_v11  ;;  %1059 = vst.msk [vmem:[%s2039_s5 + $0x18] sm:$0xff] %vm1039_vm3, %v1803_v11  ;;  %v675_v28 = vmul.f32 1.442695, %v657_v21  ;;  %v1820_v30 = vpop.eup %1290 }
 0x1ae   :  { %1306 = vpow2.f32 %v693_v5  ;;  %v1832_v27 = vpop.eup %1292  ;;  %v661_v2 = vsub.f32 -1e+30, %v1704_v56 }
 0x1af   :  { %v911_v17 = vmul.f32 1.442695, %v895_v10  ;;  %1308 = vpow2.f32 %v929_v7  ;;  %v917_v22 = vmul.f32 1.442695, %v898_v14  ;;  %v1295_v32 = vpop.eup %1294  ;;  %v685_v10 = vmul.f32 1.442695, %v662_v38 }
 0x1b0   :  { %v1818_v23 = vpop.xlane.xlu0 %879  ;;  %v1829_v25 = vpop.xlane.xlu1 %885 }
 0x1b1   :  { %1310 = vpow2.f32 %v911_v17  ;;  %v903_v24 = vsub.f32 %v1666_v36, %v1818_v23  ;;  %1064 = vst.msk [vmem:[%s2039_s5 + $0x40] sm:$0xff] %vm1039_vm3, %v1818_v23  ;;  %v906_v29 = vsub.f32 %v1668_v37, %v1829_v25  ;;  %1067 = vst.msk [vmem:[%s2039_s5 + $0x58] sm:$0xff] %vm1039_vm3, %v1829_v25  ;;  %v691_v36 = vmul.f32 1.442695, %v665_v12  ;;  %v1297_v40 = vpop.eup %1296 }
 0x1b2   :  { %1312 = vpow2.f32 %v675_v28  ;;  %v667_v37 = vsub.f32 -1e+30, %v1694_v52  ;;  %v1845_v46 = vpop.eup %1298  ;;  %v728_v7 = vmul.f32 0.0, %v1297_v40 }
 0x1b3   :  { %v927_v33 = vmul.f32 1.442695, %v903_v24  ;;  %1314 = vpow2.f32 %v681_v18  ;;  %v933_v41 = vmul.f32 1.442695, %v906_v29  ;;  %v1301_v1 = vpop.eup %1300 }
 0x1b4   :  { %1316 = vpow2.f32 %v917_v22  ;;  %v1842_v43 = vpop.xlane.xlu0 %883  ;;  %v1854_v59 = vpop.xlane.xlu1 %867  ;;  %v695_v15 = vmul.f32 1.442695, %v667_v37  ;;  %v669_v22 = vsub.f32 -1e+30, %v1719_v60 }
 0x1b5   :  { %1318 = vpow2.f32 %v927_v33  ;;  %v905_v50 = vsub.f32 %v1678_v45, %v1842_v43  ;;  %1066 = vst.msk [vmem:[%s2039_s5 + $0x50] sm:$0xff] %vm1039_vm3, %v1842_v43  ;;  %v897_v21 = vsub.f32 %v1682_v47, %v1854_v59  ;;  %1058 = vst.msk [vmem:[%s2039_s5 + $0x10] sm:$0xff] %vm1039_vm3, %v1854_v59  ;;  %v719_v45 = vmul.f32 0.0, %v1295_v32  ;;  %v1303_v5 = vpop.eup %1302 }
 0x1b6   :  { %1320 = vpow2.f32 %v691_v36  ;;  %v727_v29 = vmul.f32 0.0, %v1303_v5  ;;  %v722_v32 = vmul.f32 0.0, %v1301_v1  ;;  %v701_v33 = vmul.f32 1.442695, %v670_v0 }
 0x1b7   :  { %1322 = vpow2.f32 %v697_v31  ;;  %v1305_v12 = vpop.eup %1304  ;;  %v931_v14 = vmul.f32 1.442695, %v905_v50  ;;  %v915_v47 = vmul.f32 1.442695, %v897_v21  ;;  %v792_v31 = vadd.f32 %v1754_v39, %v728_v7 }
 0x1b8   :  { %1324 = vpow2.f32 %v933_v41  ;;  %v1866_v28 = vpop.xlane.xlu0 %871  ;;  %v1307_v17 = vpop.eup %1306  ;;  %v944_v34 = vmul.f32 %v1305_v12, %v784_v20  ;;  %v749_v1 = vsub.f32 %v1712_v58, %v1719_v60 }
 0x1b9   :  { %v1868_v18 = vpop.xlane.xlu1 %873  ;;  %v899_v19 = vsub.f32 %v1684_v48, %v1866_v28  ;;  %1060 = vst.msk [vmem:[%s2039_s5 + $0x20] sm:$0xff] %vm1039_vm3, %v1866_v28  ;;  %1326 = vpow2.f32 %v679_v63  ;;  %v1309_v24 = vpop.eup %1308  ;;  %v783_v48 = vadd.f32 %v1757_v42, %v719_v45  ;;  %v683_v63 = vmul.f32 1.442695, %v661_v2 }
 0x1ba   :  { %1328 = vpow2.f32 %v915_v47  ;;  %v900_v26 = vsub.f32 %v1687_v49, %v1868_v18  ;;  %1061 = vst.msk [vmem:[%s2039_s5 + $0x28] sm:$0xff] %vm1039_vm3, %v1868_v18  ;;  %961 = vadd.xlane.f32.xlu1 %v944_v34  ;;  %v952_v39 = vmul.f32 %v1309_v24, %v792_v31  ;;  %v786_v2 = vadd.f32 %v1768_v62, %v722_v32 }
 0x1bb   :  { %v1311_v36 = vpop.eup %1310  ;;  %1330 = vpow2.f32 %v685_v10  ;;  %v919_v49 = vmul.f32 1.442695, %v899_v19  ;;  %v730_v5 = vmul.f32 0.0, %v1307_v17 }
 0x1bc   :  { %v1313_v35 = vpop.eup %1312  ;;  %1332 = vpow2.f32 %v931_v14  ;;  %v921_v38 = vmul.f32 1.442695, %v900_v26  ;;  %v1887_v40 = vpop.xlane.xlu0 %887  ;;  %v943_v41 = vmul.f32 %v1311_v36, %v783_v48 }
 0x1bd   :  { %v1315_v37 = vpop.eup %1314  ;;  %v1889_v50 = vpop.xlane.xlu1 %889  ;;  %v907_v42 = vsub.f32 %v1694_v52, %v1887_v40  ;;  %1068 = vst.msk [vmem:[%s2039_s5 + $0x60] sm:$0xff] %vm1039_vm3, %v1887_v40  ;;  %1334 = vpow2.f32 %v695_v15  ;;  %v791_v52 = vadd.f32 %v1759_v44, %v727_v29  ;;  %v721_v20 = vmul.f32 0.0, %v1313_v35 }
 0x1be   :  { %v1317_v0 = vpop.eup %1316  ;;  %1336 = vpow2.f32 %v921_v38  ;;  %v908_v21 = vsub.f32 %v1697_v53, %v1889_v50  ;;  %1069 = vst.msk [vmem:[%s2039_s5 + $0x68] sm:$0xff] %vm1039_vm3, %v1889_v50  ;;  %959 = vadd.xlane.f32.xlu0 %v943_v41  ;;  %977 = vadd.xlane.f32.xlu1 %v952_v39  ;;  %v699_v15 = vmul.f32 1.442695, %v669_v22  ;;  %v794_v34 = vadd.f32 %v1762_v51, %v730_v5 }
 0x1bf   :  { %v1319_v45 = vpop.eup %1318  ;;  %1338 = vpow2.f32 %v701_v33  ;;  %v935_v53 = vmul.f32 1.442695, %v907_v42  ;;  %v946_v62 = vmul.f32 %v1317_v0, %v786_v2  ;;  %v785_v24 = vadd.f32 %v1784_v3, %v721_v20 }
 0x1c0   :  { %v1321_v58 = vpop.eup %1320  ;;  %1340 = vpow2.f32 %v919_v49  ;;  %v937_v7 = vmul.f32 1.442695, %v908_v21  ;;  %v1909_v10 = vpop.xlane.xlu0 %875  ;;  %v951_v12 = vmul.f32 %v1319_v45, %v791_v52  ;;  %v724_v26 = vmul.f32 0.0, %v1315_v37 }
 0x1c1   :  { %v1323_v14 = vpop.eup %1322  ;;  %v1911_v47 = vpop.xlane.xlu1 %877  ;;  %v901_v44 = vsub.f32 %v1704_v56, %v1909_v10  ;;  %1062 = vst.msk [vmem:[%s2039_s5 + $0x30] sm:$0xff] %vm1039_vm3, %v1909_v10  ;;  %1342 = vpow2.f32 %v683_v63  ;;  %v729_v22 = vmul.f32 0.0, %v1321_v58  ;;  %v779_v29 = vmul.f32 1.442695, %v749_v1 }
 0x1c2   :  { %v1325_v17 = vpop.eup %1324  ;;  %1344 = vpow2.f32 %v937_v7  ;;  %v902_v19 = vsub.f32 %v1707_v57, %v1911_v47  ;;  %1063 = vst.msk [vmem:[%s2039_s5 + $0x38] sm:$0xff] %vm1039_vm3, %v1911_v47  ;;  %975 = vadd.xlane.f32.xlu0 %v951_v12  ;;  %965 = vadd.xlane.f32.xlu1 %v946_v62  ;;  %v788_v41 = vadd.f32 %v1790_v6, %v724_v26  ;;  %v732_v42 = vmul.f32 0.0, %v1323_v14 }
 0x1c3   :  { %v1327_v56 = vpop.eup %1326  ;;  %1346 = vpow2.f32 %v935_v53  ;;  %v923_v57 = vmul.f32 1.442695, %v901_v44  ;;  %v954_v51 = vmul.f32 %v1325_v17, %v794_v34  ;;  %v793_v37 = vadd.f32 %v1787_v4, %v729_v22 }
 0x1c4   :  { %v1329_v48 = vpop.eup %1328  ;;  %v925_v36 = vmul.f32 1.442695, %v902_v19  ;;  %v1929_v31 = vpop.xlane.xlu0 %891  ;;  %1348 = vpow2.f32 %v699_v15  ;;  %v723_v39 = vmul.f32 0.0, %v1327_v56  ;;  %v796_v5 = vadd.f32 %v1806_v13, %v732_v42 }
 0x1c5   :  { %v1331_v32 = vpop.eup %1330  ;;  %v1931_v33 = vpop.xlane.xlu1 %893  ;;  %v909_v35 = vsub.f32 %v1719_v60, %v1929_v31  ;;  %1070 = vst.msk [vmem:[%s2039_s5 + $0x70] sm:$0xff] %vm1039_vm3, %v1929_v31  ;;  %v945_v3 = vmul.f32 %v1329_v48, %v785_v24 }
 0x1c6   :  { %v1333_v38 = vpop.eup %1332  ;;  %1350 = vpow2.f32 %v925_v36  ;;  %v910_v49 = vsub.f32 %v1723_v61, %v1931_v33  ;;  %1071 = vst.msk [vmem:[%s2039_s5 + $0x78] sm:$0xff] %vm1039_vm3, %v1931_v33  ;;  %981 = vadd.xlane.f32.xlu1 %v954_v51  ;;  %v787_v6 = vadd.f32 %v1794_v9, %v723_v39  ;;  %v726_v4 = vmul.f32 0.0, %v1331_v32 }
 0x1c7   :  { %v1335_v60 = vpop.eup %1334  ;;  %963 = vadd.xlane.f32.xlu0 %v945_v3  ;;  %1352 = vpow2.f32 %v923_v57  ;;  %v939_v1 = vmul.f32 1.442695, %v909_v35  ;;  %v953_v52 = vmul.f32 %v1333_v38, %v793_v37 }
 0x1c8   :  { %v1337_v63 = vpop.eup %1336  ;;  %v941_v0 = vmul.f32 1.442695, %v910_v49  ;;  %1354 = vpow2.f32 %v779_v29  ;;  %v731_v20 = vmul.f32 0.0, %v1335_v60  ;;  %v790_v44 = vadd.f32 %v1820_v30, %v726_v4 }
 0x1c9   :  { %v1339_v61 = vpop.eup %1338  ;;  %v948_v21 = vmul.f32 %v1337_v63, %v788_v41 }
 0x1ca   :  { %v1341_v45 = vpop.eup %1340  ;;  %1356 = vpow2.f32 %v941_v0  ;;  %v795_v62 = vadd.f32 %v1816_v16, %v731_v20  ;;  %v734_v15 = vmul.f32 0.0, %v1339_v61 }
 0x1cb   :  { %v1343_v2 = vpop.eup %1342  ;;  %969 = vadd.xlane.f32.xlu1 %v948_v21  ;;  %979 = vadd.xlane.f32.xlu0 %v953_v52  ;;  %1358 = vpow2.f32 %v939_v1  ;;  %v947_v53 = vmul.f32 %v1341_v45, %v787_v6 }
 0x1cc   :  { %v1345_v58 = vpop.eup %1344  ;;  %v725_v17 = vmul.f32 0.0, %v1343_v2  ;;  %v798_v24 = vadd.f32 %v1845_v46, %v734_v15 }
 0x1cd   :  { %v956_v7 = vmul.f32 %v1345_v58, %v796_v5  ;;  %v1347_v12 = vpop.eup %1346 }
 0x1ce   :  { %v1349_v14 = vpop.eup %1348  ;;  %v955_v56 = vmul.f32 %v1347_v12, %v795_v62  ;;  %v789_v26 = vadd.f32 %v1832_v27, %v725_v17 }
 0x1cf   :  { %985 = vadd.xlane.f32.xlu1 %v956_v7  ;;  %967 = vadd.xlane.f32.xlu0 %v947_v53  ;;  %v733_v22 = vmul.f32 0.0, %v1349_v14 }
 0x1d0   :  { %v1351_v19 = vpop.eup %1350 }
 0x1d1   :  { %v950_v13 = vmul.f32 %v1351_v19, %v790_v44  ;;  %v1353_v9 = vpop.eup %1352 }
 0x1d2   :  { %v1355_v34 = vpop.eup %1354  ;;  %v949_v36 = vmul.f32 %v1353_v9, %v789_v26 }
 0x1d3   :  { %973 = vadd.xlane.f32.xlu1 %v950_v13  ;;  %983 = vadd.xlane.f32.xlu0 %v955_v56  ;;  %v797_v16 = vadd.f32 %v1355_v34, %v733_v22 }
 0x1d4   :  { %v1357_v48 = vpop.eup %1356 }
 0x1d5   :  { %v958_v29 = vmul.f32 %v1357_v48, %v798_v24  ;;  %v1359_v30 = vpop.eup %1358 }
 0x1d6   :  { %v957_v57 = vmul.f32 %v1359_v30, %v797_v16 }
 0x1d7   :  { %989 = vadd.xlane.f32.xlu1 %v958_v29  ;;  %971 = vadd.xlane.f32.xlu0 %v949_v36 }
 0x1db   :  { %987 = vadd.xlane.f32.xlu0 %v957_v57 }
 0x247   :  { %v962_v32 = vpop.xlane.xlu1 %961 }
 0x248   :  { %1360 = vlog2.f32 %v962_v32 }
 0x24b   :  { %v960_v35 = vpop.xlane.xlu0 %959  ;;  %v978_v51 = vpop.xlane.xlu1 %977 }
 0x24c   :  { %1362 = vlog2.f32 %v960_v35 }
 0x24d   :  { %1364 = vlog2.f32 %v978_v51 }
 0x24f   :  { %v976_v3 = vpop.xlane.xlu0 %975  ;;  %v966_v46 = vpop.xlane.xlu1 %965 }
 0x250   :  { %1366 = vlog2.f32 %v976_v3 }
 0x251   :  { %1368 = vlog2.f32 %v966_v46 }
 0x252   :  { %v1361_v27 = vpop.eup %1360 }
 0x253   :  { %v994_v38 = vmul.f32 0.6931472, %v1361_v27  ;;  %v982_v49 = vpop.xlane.xlu1 %981 }
 0x254   :  { %v964_v60 = vpop.xlane.xlu0 %963  ;;  %1370 = vlog2.f32 %v982_v49 }
 0x255   :  { %v1024_v37 = vadd.f32 %v994_v38, %v1766_v55  ;;  %1372 = vlog2.f32 %v964_v60 }
 0x256   :  { %v1363_v41 = vpop.eup %1362 }
 0x257   :  { %v1365_v42 = vpop.eup %1364  ;;  %v992_v39 = vmul.f32 0.6931472, %v1363_v41  ;;  %1041 = vst.msk [vmem:[%s2040_s4 + $0x8] sm:$0xff] %vm1039_vm3, %v1024_v37 }
 0x258   :  { %v1010_v63 = vmul.f32 0.6931472, %v1365_v42  ;;  %v970_v0 = vpop.xlane.xlu1 %969  ;;  %v980_v1 = vpop.xlane.xlu0 %979 }
 0x259   :  { %v1023_v61 = vadd.f32 %v992_v39, %v1792_v8  ;;  %1374 = vlog2.f32 %v970_v0 }
 0x25a   :  { %v1367_v21 = vpop.eup %1366  ;;  %v1032_v52 = vadd.f32 %v1010_v63, %v1764_v54  ;;  %1376 = vlog2.f32 %v980_v1 }
 0x25b   :  { %v1369_v45 = vpop.eup %1368  ;;  %1040 = vst.msk [vmem:[%s2040_s4] sm:$0xff] %vm1039_vm3, %v1023_v61  ;;  %v1008_v55 = vmul.f32 0.6931472, %v1367_v21 }
 0x25c   :  { %1049 = vst.msk [vmem:[%s2040_s4 + $0x48] sm:$0xff] %vm1039_vm3, %v1032_v52  ;;  %v998_v2 = vmul.f32 0.6931472, %v1369_v45  ;;  %v986_v5 = vpop.xlane.xlu1 %985  ;;  %v968_v8 = vpop.xlane.xlu0 %967 }
 0x25d   :  { %v1031_v6 = vadd.f32 %v1008_v55, %v1818_v23  ;;  %1378 = vlog2.f32 %v986_v5 }
 0x25e   :  { %v1026_v54 = vadd.f32 %v998_v2, %v1803_v11  ;;  %1380 = vlog2.f32 %v968_v8  ;;  %v1371_v4 = vpop.eup %1370 }
 0x25f   :  { %1048 = vst.msk [vmem:[%s2040_s4 + $0x40] sm:$0xff] %vm1039_vm3, %v1031_v6  ;;  %v1373_v20 = vpop.eup %1372  ;;  %v1014_v58 = vmul.f32 0.6931472, %v1371_v4 }
 0x260   :  { %1043 = vst.msk [vmem:[%s2040_s4 + $0x18] sm:$0xff] %vm1039_vm3, %v1026_v54  ;;  %v974_v7 = vpop.xlane.xlu1 %973  ;;  %v984_v53 = vpop.xlane.xlu0 %983  ;;  %v996_v23 = vmul.f32 0.6931472, %v1373_v20 }
 0x261   :  { %1382 = vlog2.f32 %v974_v7  ;;  %v1034_v11 = vadd.f32 %v1014_v58, %v1829_v25 }
 0x262   :  { %1384 = vlog2.f32 %v984_v53  ;;  %v1025_v14 = vadd.f32 %v996_v23, %v1854_v59 }
 0x263   :  { %v1375_v12 = vpop.eup %1374  ;;  %1051 = vst.msk [vmem:[%s2040_s4 + $0x58] sm:$0xff] %vm1039_vm3, %v1034_v11 }
 0x264   :  { %v1377_v44 = vpop.eup %1376  ;;  %v1002_v62 = vmul.f32 0.6931472, %v1375_v12  ;;  %v990_v15 = vpop.xlane.xlu1 %989  ;;  %1042 = vst.msk [vmem:[%s2040_s4 + $0x10] sm:$0xff] %vm1039_vm3, %v1025_v14 }
 0x265   :  { %v972_v17 = vpop.xlane.xlu0 %971  ;;  %v1012_v19 = vmul.f32 0.6931472, %v1377_v44  ;;  %1386 = vlog2.f32 %v990_v15 }
 0x266   :  { %v1028_v25 = vadd.f32 %v1002_v62, %v1868_v18  ;;  %1388 = vlog2.f32 %v972_v17 }
 0x267   :  { %v1379_v59 = vpop.eup %1378  ;;  %v1033_v13 = vadd.f32 %v1012_v19, %v1842_v43 }
 0x268   :  { %v1381_v56 = vpop.eup %1380  ;;  %1045 = vst.msk [vmem:[%s2040_s4 + $0x28] sm:$0xff] %vm1039_vm3, %v1028_v25  ;;  %v1018_v9 = vmul.f32 0.6931472, %v1379_v59 }
 0x269   :  { %v988_v34 = vpop.xlane.xlu0 %987  ;;  %1050 = vst.msk [vmem:[%s2040_s4 + $0x50] sm:$0xff] %vm1039_vm3, %v1033_v13  ;;  %v1000_v24 = vmul.f32 0.6931472, %v1381_v56 }
 0x26a   :  { %1390 = vlog2.f32 %v988_v34  ;;  %v1036_v18 = vadd.f32 %v1018_v9, %v1889_v50 }
 0x26b   :  { %v1383_v26 = vpop.eup %1382  ;;  %v1027_v43 = vadd.f32 %v1000_v24, %v1866_v28 }
 0x26c   :  { %v1385_v22 = vpop.eup %1384  ;;  %1053 = vst.msk [vmem:[%s2040_s4 + $0x68] sm:$0xff] %vm1039_vm3, %v1036_v18  ;;  %v1006_v48 = vmul.f32 0.6931472, %v1383_v26 }
 0x26d   :  { %1044 = vst.msk [vmem:[%s2040_s4 + $0x20] sm:$0xff] %vm1039_vm3, %v1027_v43  ;;  %v1016_v29 = vmul.f32 0.6931472, %v1385_v22 }
 0x26e   :  { %v1030_v36 = vadd.f32 %v1006_v48, %v1911_v47 }
 0x26f   :  { %v1387_v30 = vpop.eup %1386  ;;  %v1035_v50 = vadd.f32 %v1016_v29, %v1887_v40 }
 0x270   :  { %v1389_v16 = vpop.eup %1388  ;;  %1047 = vst.msk [vmem:[%s2040_s4 + $0x38] sm:$0xff] %vm1039_vm3, %v1030_v36  ;;  %v1022_v28 = vmul.f32 0.6931472, %v1387_v30 }
 0x271   :  { %1052 = vst.msk [vmem:[%s2040_s4 + $0x60] sm:$0xff] %vm1039_vm3, %v1035_v50  ;;  %v1004_v57 = vmul.f32 0.6931472, %v1389_v16 }
 0x272   :  { %v1038_v32 = vadd.f32 %v1022_v28, %v1931_v33 }
 0x273   :  { %v1029_v47 = vadd.f32 %v1004_v57, %v1909_v10 }
 0x274   :  { %v1391_v35 = vpop.eup %1390  ;;  %1055 = vst.msk [vmem:[%s2040_s4 + $0x78] sm:$0xff] %vm1039_vm3, %v1038_v32 }
 0x275   :  { %v1020_v40 = vmul.f32 0.6931472, %v1391_v35  ;;  %1046 = vst.msk [vmem:[%s2040_s4 + $0x30] sm:$0xff] %vm1039_vm3, %v1029_v47 }
 0x277   :  { %v1037_v51 = vadd.f32 %v1020_v40, %v1929_v31 }
 0x279   :  { %1054 = vst.msk [vmem:[%s2040_s4 + $0x70] sm:$0xff] %vm1039_vm3, %v1037_v51 }

</bundles_post_ra>
